<compile_context>
chip_gen: v6e
topology: v6e:2x2x1
jax: 0.10.0
libtpu: 0.0.40
codegen_flags: <defaults>
</compile_context>

<pallas_src>
import jax
import jax.numpy as jnp
from jax import lax
from jax.experimental import pallas as pl
from jax.experimental.pallas import tpu as pltpu

BN_EPS = 1e-5


def mlp_head_kernel(x_ref, w1_ref, pkd_ref, w2_ref, o_ref):
    H = w1_ref.shape[1]
    P = w2_ref.shape[1]

    # ---- Linear 1 (MXU). b1 intentionally omitted: cancelled by the
    # training-mode BatchNorm that follows. ----
    x = x_ref[0]                                            # (B, C)
    h = jnp.dot(x, w1_ref[...], preferred_element_type=jnp.float32)  # (B, H)

    # ---- BatchNorm1d, training-mode forward (biased batch variance), affine
    # folded into a single scale+shift on centered activations:
    #   y = d * s + beta,  d = h - mean,  s = gamma * rsqrt(var + eps). ----
    mean = jnp.mean(h, axis=0, keepdims=True)               # (1, H)
    d = h - mean                                            # (B, H)
    var = jnp.mean(d * d, axis=0, keepdims=True)            # (1, H)

    pkd = pkd_ref[...]                                      # (3, max(H, P)) one DMA
    gamma = pkd[0:1, :H]
    beta = pkd[1:2, :H]
    b2 = pkd[2:3, :P]

    s = gamma * lax.rsqrt(var + BN_EPS)                     # (1, H)

    # ---- ReLU fused with the folded BN affine (VPU) ----
    r = jnp.maximum(d * s + beta, 0.0)                      # (B, H)

    # ---- Linear 2 (MXU) + bias ----
    out = jnp.dot(r, w2_ref[...], preferred_element_type=jnp.float32) + b2
    o_ref[0] = out.astype(o_ref.dtype)


def prepare_mlp_head_params(w1, b1, gamma, beta, w2, b2):
    """One-time parameter preparation (keep OUT of the per-call path).

    Drops b1 (mathematically redundant under training-mode BN) and packs the
    small vector parameters into a single array so the kernel issues one DMA
    for them instead of three.
    """
    del b1  # cancelled exactly by the training-mode BatchNorm
    H = w1.shape[1]
    P = w2.shape[1]
    W = max(H, P)
    packed = jnp.zeros((3, W), jnp.float32)
    packed = packed.at[0, :H].set(jnp.ravel(gamma))
    packed = packed.at[1, :H].set(jnp.ravel(beta))
    packed = packed.at[2, :P].set(jnp.ravel(b2))
    return w1, packed, w2


def mlp_head(x, w1, packed, w2):
    """Forward pass of MLPHead.

    x: (B, C) single batch, or (G, B, C) = G independent batches (one full
    batch per grid step; BN statistics are computed per batch, matching a
    vmap of the PyTorch module over G).
    """
    squeeze = x.ndim == 2
    if squeeze:
        x = x[None]
    G, B, C = x.shape
    H = w1.shape[1]
    P = w2.shape[1]
    W = packed.shape[1]

    itemsize = jnp.dtype(jnp.float32).itemsize
    bytes_accessed = itemsize * (
        G * B * C + C * H + 3 * W + H * P + G * B * P
    )

    out = pl.pallas_call(
        mlp_head_kernel,
        out_shape=jax.ShapeDtypeStruct((G, B, P), x.dtype),
        grid=(G,),
        in_specs=[
            pl.BlockSpec((1, B, C), lambda g: (g, 0, 0)),   # x (per-batch block)
            pl.BlockSpec((C, H), lambda g: (0, 0)),         # w1 (resident)
            pl.BlockSpec((3, W), lambda g: (0, 0)),         # packed gamma/beta/b2
            pl.BlockSpec((H, P), lambda g: (0, 0)),         # w2 (resident)
        ],
        out_specs=pl.BlockSpec((1, B, P), lambda g: (g, 0, 0)),
        compiler_params=pltpu.CompilerParams(
            dimension_semantics=("parallel",)),             # shards groups on v7x 2xTC
        cost_estimate=pl.CostEstimate(
            flops=2 * G * B * (C * H + H * P),
            transcendentals=G * H,                          # rsqrt per hidden lane
            bytes_accessed=bytes_accessed),
    )(x, w1, packed, w2)

    return out[0] if squeeze else out


def mlp_head_ref(x, w1, b1, gamma, beta, w2, b2):
    # Faithful reference of the PyTorch module (including b1 and BN training
    # mode) — the kernel must match this even though it drops b1.
    h = x @ w1 + b1
    mean = jnp.mean(h, axis=0, keepdims=True)
    var = jnp.mean((h - mean) ** 2, axis=0, keepdims=True)
    h = (h - mean) / jnp.sqrt(var + BN_EPS) * gamma + beta
    r = jnp.maximum(h, 0.0)
    return r @ w2 + b2


if __name__ == "__main__":
    # Shapes consistent with MLPHead(in_channels=32, mlp_hidden_size=64,
    # projection_size=16) applied to a batch of 8 feature vectors.
    B, C, H, P = 8, 32, 64, 16

    key = jax.random.PRNGKey(0)
    kx, kxg, kw1, kb1, kw2, kb2 = jax.random.split(key, 6)

    x = jax.random.normal(kx, (B, C), dtype=jnp.float32)

    # Deterministic parameter init (uniform, PyTorch-Linear-style scale).
    w1 = jax.random.uniform(kw1, (C, H), jnp.float32, -1.0, 1.0) / jnp.sqrt(C)
    b1 = jax.random.uniform(kb1, (1, H), jnp.float32, -1.0, 1.0) / jnp.sqrt(C)
    gamma = jnp.ones((1, H), jnp.float32)   # BatchNorm1d weight init
    beta = jnp.zeros((1, H), jnp.float32)   # BatchNorm1d bias init
    w2 = jax.random.uniform(kw2, (H, P), jnp.float32, -1.0, 1.0) / jnp.sqrt(H)
    b2 = jax.random.uniform(kb2, (1, P), jnp.float32, -1.0, 1.0) / jnp.sqrt(H)

    # One-time parameter prep (packing / b1 drop) — NOT on the per-call path.
    w1_p, packed, w2_p = prepare_mlp_head_params(w1, b1, gamma, beta, w2, b2)

    # --- Single-batch path (matches the PyTorch module exactly) ---
    out = mlp_head(x, w1_p, packed, w2_p)
    out = jax.block_until_ready(out)
    ref = mlp_head_ref(x, w1, b1, gamma, beta, w2, b2)
    assert out.shape == (B, P)
    assert jnp.allclose(out, ref, atol=1e-4, rtol=1e-4), "mismatch vs reference"

    # --- Grouped path: G independent batches, one per grid step ---
    G = 2
    xg = jax.random.normal(kxg, (G, B, C), dtype=jnp.float32)
    outg = mlp_head(xg, w1_p, packed, w2_p)
    outg = jax.block_until_ready(outg)
    refg = jax.vmap(
        lambda xx: mlp_head_ref(xx, w1, b1, gamma, beta, w2, b2))(xg)
    assert outg.shape == (G, B, P)
    assert jnp.allclose(outg, refg, atol=1e-4, rtol=1e-4), "grouped mismatch"

    print("KERNEL_OK")
</pallas_src>

<mosaic_0001>
module attributes {stable_mosaic.version = 11 : i64} {
  func.func @mlp_head_kernel(%arg0: i32, %arg1: memref<1x8x32xf32, #tpu.memory_space<vmem>>, %arg2: memref<32x64xf32, #tpu.memory_space<vmem>>, %arg3: memref<3x64xf32, #tpu.memory_space<vmem>>, %arg4: memref<64x16xf32, #tpu.memory_space<vmem>>, %arg5: memref<1x8x16xf32, #tpu.memory_space<vmem>>) attributes {dimension_semantics = [#tpu.dimension_semantics<parallel>], iteration_bounds = array<i64: 1>, scalar_prefetch = 0 : i64, scratch_operands = 0 : i64, tpu.core_type = #tpu.core_type<tc>, window_params = [{transform_indices = @transform_0, window_bounds = array<i64: 1, 8, 32>}, {pipeline_mode = #tpu.pipeline_mode<synchronous>, transform_indices = @transform_1, window_bounds = array<i64: 32, 64>}, {pipeline_mode = #tpu.pipeline_mode<synchronous>, transform_indices = @transform_2, window_bounds = array<i64: 3, 64>}, {pipeline_mode = #tpu.pipeline_mode<synchronous>, transform_indices = @transform_3, window_bounds = array<i64: 64, 16>}, {transform_indices = @transform_4, window_bounds = array<i64: 1, 8, 16>}]} {
    %c0 = arith.constant 0 : index
    %c0_0 = arith.constant 0 : index
    %c0_1 = arith.constant 0 : index
    %0 = vector.load %arg1[%c0, %c0_0, %c0_1] : memref<1x8x32xf32, #tpu.memory_space<vmem>>, vector<1x8x32xf32>
    %1 = vector.shape_cast %0 : vector<1x8x32xf32> to vector<8x32xf32>
    %c0_2 = arith.constant 0 : index
    %c0_3 = arith.constant 0 : index
    %2 = vector.load %arg2[%c0_2, %c0_3] : memref<32x64xf32, #tpu.memory_space<vmem>>, vector<32x64xf32>
    %cst = arith.constant dense<0.000000e+00> : vector<8x64xf32>
    %3 = tpu.matmul %1, %2, %cst {dimension_numbers = #tpu.dot_dimension_numbers<[1], [0], [0], [1], [0, 0, 1, 1], [], []>} : vector<8x32xf32>, vector<32x64xf32>, vector<8x64xf32> -> vector<8x64xf32>
    %cst_4 = arith.constant dense<0.000000e+00> : vector<64xf32>
    %4 = vector.multi_reduction <add>, %3, %cst_4 [0] : vector<8x64xf32> to vector<64xf32>
    %5 = vector.shape_cast %4 : vector<64xf32> to vector<1x64xf32>
    %cst_5 = arith.constant 8.000000e+00 : f32
    %6 = vector.broadcast %cst_5 : f32 to vector<1x64xf32>
    %7 = arith.divf %5, %6 : vector<1x64xf32>
    %8 = vector.broadcast %7 : vector<1x64xf32> to vector<8x64xf32>
    %9 = arith.subf %3, %8 : vector<8x64xf32>
    %10 = arith.mulf %9, %9 : vector<8x64xf32>
    %cst_6 = arith.constant dense<0.000000e+00> : vector<64xf32>
    %11 = vector.multi_reduction <add>, %10, %cst_6 [0] : vector<8x64xf32> to vector<64xf32>
    %12 = vector.shape_cast %11 : vector<64xf32> to vector<1x64xf32>
    %cst_7 = arith.constant 8.000000e+00 : f32
    %13 = vector.broadcast %cst_7 : f32 to vector<1x64xf32>
    %14 = arith.divf %12, %13 : vector<1x64xf32>
    %c0_8 = arith.constant 0 : index
    %c0_9 = arith.constant 0 : index
    %15 = vector.load %arg3[%c0_8, %c0_9] : memref<3x64xf32, #tpu.memory_space<vmem>>, vector<3x64xf32>
    %16 = vector.extract_strided_slice %15 {offsets = [0, 0], sizes = [1, 64], strides = [1, 1]} : vector<3x64xf32> to vector<1x64xf32>
    %17 = vector.extract_strided_slice %15 {offsets = [1, 0], sizes = [1, 64], strides = [1, 1]} : vector<3x64xf32> to vector<1x64xf32>
    %18 = vector.extract_strided_slice %15 {offsets = [2, 0], sizes = [1, 16], strides = [1, 1]} : vector<3x64xf32> to vector<1x16xf32>
    %cst_10 = arith.constant 9.99999974E-6 : f32
    %19 = vector.broadcast %cst_10 : f32 to vector<1x64xf32>
    %20 = arith.addf %14, %19 : vector<1x64xf32>
    %21 = math.rsqrt %20 : vector<1x64xf32>
    %22 = arith.mulf %16, %21 : vector<1x64xf32>
    %23 = vector.broadcast %22 : vector<1x64xf32> to vector<8x64xf32>
    %24 = arith.mulf %9, %23 : vector<8x64xf32>
    %25 = vector.broadcast %17 : vector<1x64xf32> to vector<8x64xf32>
    %26 = arith.addf %24, %25 : vector<8x64xf32>
    %cst_11 = arith.constant 0.000000e+00 : f32
    %27 = vector.broadcast %cst_11 : f32 to vector<8x64xf32>
    %28 = arith.maximumf %26, %27 : vector<8x64xf32>
    %c0_12 = arith.constant 0 : index
    %c0_13 = arith.constant 0 : index
    %29 = vector.load %arg4[%c0_12, %c0_13] : memref<64x16xf32, #tpu.memory_space<vmem>>, vector<64x16xf32>
    %cst_14 = arith.constant dense<0.000000e+00> : vector<8x16xf32>
    %30 = tpu.matmul %28, %29, %cst_14 {dimension_numbers = #tpu.dot_dimension_numbers<[1], [0], [0], [1], [0, 0, 1, 1], [], []>} : vector<8x64xf32>, vector<64x16xf32>, vector<8x16xf32> -> vector<8x16xf32>
    %31 = vector.broadcast %18 : vector<1x16xf32> to vector<8x16xf32>
    %32 = arith.addf %30, %31 : vector<8x16xf32>
    %c0_15 = arith.constant 0 : index
    %c0_16 = arith.constant 0 : index
    %c0_17 = arith.constant 0 : index
    %33 = vector.load %arg5[%c0_15, %c0_16, %c0_17] : memref<1x8x16xf32, #tpu.memory_space<vmem>>, vector<1x8x16xf32>
    %34 = vector.shape_cast %33 : vector<1x8x16xf32> to vector<8x16xf32>
    %35 = vector.shape_cast %32 : vector<8x16xf32> to vector<1x8x16xf32>
    tpu.vector_store %arg5[%c0_15, %c0_16, %c0_17], %35 {strides = array<i32>} : memref<1x8x16xf32, #tpu.memory_space<vmem>>, vector<1x8x16xf32>,
    return
  }
  func.func @transform_0(%arg0: i32) -> (i32, i32, i32) {
    %c0_i32 = arith.constant 0 : i32
    %c0_i32_0 = arith.constant 0 : i32
    %c0_i32_1 = arith.constant 0 : i32
    return %arg0, %c0_i32, %c0_i32_0 : i32, i32, i32
  }
  func.func @transform_1(%arg0: i32) -> (i32, i32) {
    %c0_i32 = arith.constant 0 : i32
    %c0_i32_0 = arith.constant 0 : i32
    %c0_i32_1 = arith.constant 0 : i32
    return %c0_i32, %c0_i32_0 : i32, i32
  }
  func.func @transform_2(%arg0: i32) -> (i32, i32) {
    %c0_i32 = arith.constant 0 : i32
    %c0_i32_0 = arith.constant 0 : i32
    %c0_i32_1 = arith.constant 0 : i32
    return %c0_i32, %c0_i32_0 : i32, i32
  }
  func.func @transform_3(%arg0: i32) -> (i32, i32) {
    %c0_i32 = arith.constant 0 : i32
    %c0_i32_0 = arith.constant 0 : i32
    %c0_i32_1 = arith.constant 0 : i32
    return %c0_i32, %c0_i32_0 : i32, i32
  }
  func.func @transform_4(%arg0: i32) -> (i32, i32, i32) {
    %c0_i32 = arith.constant 0 : i32
    %c0_i32_0 = arith.constant 0 : i32
    %c0_i32_1 = arith.constant 0 : i32
    return %arg0, %c0_i32, %c0_i32_0 : i32, i32, i32
  }
}

</mosaic_0001>

<bundles_post_ra>
// kernel: tpu_custom_call.1
= control target key start
LH: loop header
LB: loop body
LE: loop exit
PB: predicated region body
PF: predicated region fallthrough
CT: control target
= control target key end

     0   :  { %v306_v1 = vmov 0.0   ;;  %vm307_vm0 = vmmov 0   ;;  %s382_s0 = inlined_call_operand.vmem [shape: f32[1,8,32], index: 0, kind: input, shape index: {}]   ;;  %s383_s1 = inlined_call_operand.vmem [shape: f32[32,64], index: 1, kind: input, shape index: {}]   ;;  %s384_s2 = inlined_call_operand.vmem [shape: f32[3,64], index: 2, kind: input, shape index: {}]   ;;  %s385_s3 = inlined_call_operand.vmem [shape: f32[64,16], index: 3, kind: input, shape index: {}]   ;;  %s386_s4 = inlined_call_operand.hbm [shape: f32[1,8,16], index: 4, kind: output, shape index: {}]  }
   0x1   :  { %v22_v0 = vld [vmem:[%s383_s1 + $0x18] sm:$0xff]  ;;  %249 = vmatprep.subr.mxu0 %v306_v1  ;;  %v21_v2 = vld [vmem:[%s383_s1 + $0x10] sm:$0xff]  ;;  %257 = vmatprep.mubr.msk.f32.mxu0 %vm307_vm0, %v306_v1 }
   0x2   :  { %9 = vsyncpa [#allocation3], 0  ;;  %250 = vmatpush3.msra.mxu0 %v22_v0  ;;  %260 = vmatprep.subr.mxu1 %v306_v1  ;;  %v20_v3 = vld [vmem:[%s383_s1 + $0x8] sm:$0xff]  ;;  %v19_v4 = vld [vmem:[%s383_s1] sm:$0xff]  ;;  %vm23_vm1 = vcmask 261120   ;;  %vm97_vm2 = vcmask 523264   ;;  %v121_v35 = vlaneseq }
   0x3   :  { %251 = vmatprep.subr.mxu0 %v306_v1  ;;  %276 = vmatprep.mubr.msk.f32.mxu1 %vm307_vm0, %v306_v1  ;;  %v18_v5 = vld [vmem:[%s382_s0] sm:$0xff]  ;;  %v139_v6 = vld [vmem:[%s385_s3 + $0x38] sm:$0xff]  ;;  %v138_v7 = vld [vmem:[%s385_s3 + $0x30] sm:$0xff]  ;;  %s308_s14 = smov [#allocation2]   ;;  %vm217_vm3 = vcmask 130048  }
   0x4   :  { %252 = vmatpush3.msra.mxu0 %v21_v2  ;;  %261 = vmatpush3.msra.mxu1 %v139_v6  ;;  %v137_v8 = vld [vmem:[%s385_s3 + $0x28] sm:$0xff]  ;;  %v136_v9 = vld [vmem:[%s385_s3 + $0x20] sm:$0xff]  ;;  %v135_v10 = vld [vmem:[%s385_s3 + $0x18] sm:$0xff]  ;;  %v122_v36 = vshrl.u32 %v121_v35, 7  ;;  %s225_s15 = sshll.u32 %s308_s14, 4  ;;  %s226_s15 = int_to_ptr.vmem [resolvable:$true] %s225_s15 }
   0x5   :  { %253 = vmatprep.subr.mxu0 %v306_v1  ;;  %262 = vmatprep.subr.mxu1 %v306_v1  ;;  %v134_v11 = vld [vmem:[%s385_s3 + $0x10] sm:$0xff]  ;;  %v133_v12 = vld [vmem:[%s385_s3 + $0x8] sm:$0xff]  ;;  %v132_v13 = vld [vmem:[%s385_s3] sm:$0xff]  ;;  %p289_p1 = scmp.lt.s32.totalorder %s226_s15, %s226_s15 }
   0x6   :  { %254 = vmatpush3.msra.mxu0 %v20_v3  ;;  %263 = vmatpush3.msra.mxu1 %v138_v7  ;;  %v117_v37 = vld [vmem:[%s384_s2] sm:$0x7]  ;;  %v123_v38 = vsub.s32 0, %v122_v36  ;;  %v128_v39 = vsub.s32 1, %v122_v36  ;;  %v142_v47 = vsub.s32 2, %v122_v36  ;;  %s284_s2 = scalar_lea.vmem %s226_s15, 128 }
   0x7   :  { %255 = vmatprep.subr.mxu0 %v306_v1  ;;  %264 = vmatprep.subr.mxu1 %v306_v1  ;;  %p285_p0 = scmp.ne.s32.totalorder %s226_s15, %s284_s2  ;;  %p290_p2 = scmp.lt.s32.totalorder %s284_s2, %s284_s2 }
   0x8   :  { %256 = vmatpush3.msra.mxu0 %v19_v4  ;;  %265 = vmatpush3.msra.mxu1 %v137_v8  ;;  %v129_v43 = vrot.slane %v117_v37, %v128_v39  ;;  %v143_v48 = vrot.slane %v117_v37, %v142_v47 }
   0x9   :  { %258 = vmatmul.mubr.msk.f32.vlgmr.msra.gmra.mxu0 %vm23_vm1, %v18_v5  ;;  %266 = vmatprep.subr.mxu1 %v306_v1  ;;  %p291_p3 = por %p290_p2, %p289_p1 }
   0xa   :  { %267 = vmatpush3.msra.mxu1 %v136_v9 }
   0xb   :  { %268 = vmatprep.subr.mxu1 %v306_v1  ;;  %p292_p4 = pnand %p291_p3, %p285_p0 }
   0xc   :  { %269 = vmatpush3.msra.mxu1 %v135_v10 }
   0xd   :  { %270 = vmatprep.subr.mxu1 %v306_v1 }
   0xe   :  { %271 = vmatpush3.msra.mxu1 %v134_v11 }
   0xf   :  { %272 = vmatprep.subr.mxu1 %v306_v1 }
  0x10   :  { %273 = vmatpush3.msra.mxu1 %v133_v12 }
  0x11   :  { %274 = vmatprep.subr.mxu1 %v306_v1 }
  0x12   :  { %275 = vmatpush3.msra.mxu1 %v132_v13 }
  0xc9   :  { %v93_v14 = vpop.f32.mrf.mxu0 }
  0xca   :  { %v98_v15 = vsel %vm97_vm2, %v93_v14, 0.0 }
  0xcb   :  { %v99_v16 = vrot.slane %v98_v15, 4  ;;  %v259_v17 = vpop.f32.mrf.mxu0 }
  0xcd   :  { %v100_v18 = vadd.f32 %v99_v16, %v98_v15 }
  0xcf   :  { %v101_v19 = vrot.slane %v100_v18, 2 }
  0xd1   :  { %v102_v20 = vadd.f32 %v101_v19, %v100_v18 }
  0xd3   :  { %v103_v21 = vrot.slane %v102_v20, 1 }
  0xd5   :  { %v104_v22 = vadd.f32 %v103_v21, %v102_v20 }
  0xd7   :  { %v106_v23 = vmul.f32 0.125, %v104_v22 }
  0xd9   :  { %v107_v24 = vsub.f32 %v93_v14, %v106_v23 }
  0xdb   :  { %v108_v25 = vmul.f32 %v107_v24, %v107_v24 }
  0xdd   :  { %v109_v26 = vsel %vm97_vm2, %v108_v25, 0.0 }
  0xde   :  { %v110_v27 = vrot.slane %v109_v26, 4 }
  0xe0   :  { %v111_v28 = vadd.f32 %v110_v27, %v109_v26 }
  0xe2   :  { %v112_v29 = vrot.slane %v111_v28, 2 }
  0xe4   :  { %v113_v30 = vadd.f32 %v112_v29, %v111_v28 }
  0xe6   :  { %v114_v31 = vrot.slane %v113_v30, 1 }
  0xe8   :  { %v115_v32 = vadd.f32 %v114_v31, %v113_v30 }
  0xea   :  { %v116_v33 = vmul.f32 0.125, %v115_v32 }
  0xec   :  { %v118_v34 = vadd.f32 1e-05, %v116_v33 }
  0xee   :  { %282 = vrsqrt.f32 %v118_v34 }
  0xfb   :  { %v283_v40 = vpop.eup %282 }
  0xfc   :  { %v120_v41 = vmul.f32 %v283_v40, %v117_v37 }
  0xfe   :  { %v124_v42 = vrot.slane %v120_v41, %v123_v38 }
 0x100   :  { %v125_v44 = vmul.f32 %v124_v42, %v107_v24 }
 0x102   :  { %v130_v45 = vadd.f32 %v129_v43, %v125_v44 }
 0x104   :  { %v131_v46 = vmax.f32 %v130_v45, 0.0 }
 0x106   :  { %277 = vmatmul.mubr.msk.f32.vlgmr.msra.gmra.mxu1 %vm97_vm2, %v131_v46 }
 0x1c6   :  { %v213_v49 = vpop.f32.mrf.mxu1 }
 0x1c7   :  { %v214_v50 = vadd.f32 %v213_v49, %v143_v48 }
 0x1c8   :  { %v278_v51 = vpop.f32.mrf.mxu1 }
 0x1c9   :  { %218 = vst.msk [vmem:[#allocation2] sm:$0xff] %vm217_vm3, %v214_v50 }
 0x1ca   :  { %295 = shalt.err (!%p292_p4)
}
 0x1cb   :  { %228 = dma.vmem_to_hbm [thread:$0]  %s226_s15, 128, %s386_s4, [#allocation3]  }
 0x1cc   :  { %304 = dma.done.wait [#allocation3], 128  }
 0x1cd   :  { %305 = vsyncadd [#allocation3], 4294967168 }
 0x1ce   :  { %232 = vsyncpa [#allocation3], 1 }

</bundles_post_ra>
